<compile_context>
chip_gen: v7x
topology: tpu7x:2x2x1
jax: 0.10.0
libtpu: 0.0.40
codegen_flags: <defaults>
</compile_context>

<pallas_src>
from functools import partial

import jax
import jax.numpy as jnp
from jax import lax
from jax.experimental import pallas as pl
from jax.experimental.pallas import tpu as pltpu

_EPS_COS_SQ = 1e-30      # clamp on ||p||^2*||t||^2 (torch CosineSimilarity eps=1e-20;
                         # 1e-40 would be f32-subnormal, so use a safely-normal clamp)
_EPS_HUBER = 1e-12       # pseudo-huber epsilon used in the torch module
_REDUCTION_MODES = ['none', 'mean', 'sum']
_TARGET_BLOCK_ELEMS = 1 << 19          # ~2 MiB f32 per input block
_VMEM_LIMIT = 48 * 1024 * 1024         # safe on v5e/v6e (128 MiB) and v7x (64 MiB/TC)


# --------------------------------------------------------------------------
# Pass 1: per-image partial sums over pixels of (1 - cosine_similarity)
# --------------------------------------------------------------------------
def _cos_partial_kernel(p_ref, t_ref, out_ref, *, hw, tile_hw, need_mask):
    i = pl.program_id(1)

    @pl.when(i == 0)
    def _():
        out_ref[...] = jnp.zeros_like(out_ref)

    p = p_ref[...].astype(jnp.float32)                     # (C, tile_hw)
    t = t_ref[...].astype(jnp.float32)
    dot = jnp.sum(p * t, axis=0, keepdims=True)            # (1, tile_hw)
    pp = jnp.sum(p * p, axis=0, keepdims=True)
    tt = jnp.sum(t * t, axis=0, keepdims=True)
    # cos = dot / max(||p||*||t||, eps)  ==  dot * rsqrt(max(pp*tt, eps^2))
    cos = dot * lax.rsqrt(jnp.maximum(pp * tt, _EPS_COS_SQ))
    term = 1.0 - cos
    if need_mask:
        col = i * tile_hw + lax.broadcasted_iota(jnp.int32, (1, tile_hw), 1)
        term = jnp.where(col < hw, term, 0.0)
    out_ref[...] += term                                   # VMEM-resident accumulator


# --------------------------------------------------------------------------
# Pass 2: partial sums of clip(base + lambda*cosine_term, lo, hi), elementwise
# --------------------------------------------------------------------------
def _loss_partial_kernel(ct_ref, p_ref, t_ref, out_ref, *, criterion,
                         loss_lambda, clip_min, clip_max, n_inner, tile_r,
                         lane, n_valid, need_mask):
    i = pl.program_id(1)

    @pl.when(i == 0)
    def _():
        out_ref[...] = jnp.zeros_like(out_ref)

    p = p_ref[...].astype(jnp.float32)                     # (tile_r, lane)
    t = t_ref[...].astype(jnp.float32)
    d = p - t
    if criterion == 'l1':
        base = jnp.abs(d)
    else:  # 'huber' (validated in the wrapper)
        base = jnp.sqrt(d * d + _EPS_HUBER)
    if loss_lambda != 0.0:
        base = base + loss_lambda * ct_ref[0, 0]           # SMEM scalar (resident)
    v = jnp.clip(base, clip_min, clip_max)
    if need_mask:
        blk = pl.program_id(0) * n_inner + i
        row = blk * tile_r + lax.broadcasted_iota(jnp.int32, (tile_r, lane), 0)
        col = lax.broadcasted_iota(jnp.int32, (tile_r, lane), 1)
        v = jnp.where(row * lane + col < n_valid, v, 0.0)
    out_ref[...] += v                                      # VMEM-resident accumulator


# --------------------------------------------------------------------------
# Layout helpers (free reshapes; padding only in the rare non-128-aligned case)
# --------------------------------------------------------------------------
def _dense_layout(total):
    for lane in (4096, 2048, 1024, 512, 256, 128):
        if total % lane == 0:
            return lane, total // lane, 0
    lane = 512
    padded = -(-total // lane) * lane
    return lane, padded // lane, padded - total


def _as_dense(x, lane, pad):
    flat = x.reshape(-1)
    if pad:
        flat = jnp.pad(flat, (0, pad))     # fallback path only (extra HBM copy)
    return flat.reshape(-1, lane)


# --------------------------------------------------------------------------
# Wrapper
# --------------------------------------------------------------------------
def chc_loss(pred, target, *, loss_weight=1.0, reduction='mean',
             criterion='huber', loss_lambda=0.0, clip_min=0.003921,
             clip_max=0.996078):
    """JAX/Pallas equivalent of chc.forward(pred, target)."""
    if reduction not in _REDUCTION_MODES:
        raise ValueError(f'Unsupported reduction mode: {reduction}. '
                         f'Supported ones are: {_REDUCTION_MODES}')
    if criterion not in ('l1', 'huber'):
        raise NotImplementedError(f'{criterion} not implemented.')
    # NOTE: the torch module always applies torch.mean regardless of
    # `reduction`, so we do the same.

    N, C, H, W = pred.shape
    HW = H * W
    total = N * C * HW
    loss_lambda = float(loss_lambda)

    # ---------------- pass 1: cosine term (skipped when lambda == 0) -------
    if loss_lambda != 0.0:
        p3 = pred.reshape(N, C, HW)        # free reshape, channel -> sublanes
        t3 = target.reshape(N, C, HW)
        tgt_hw = max(128, (_TARGET_BLOCK_ELEMS // max(C, 1)) // 128 * 128)
        if HW <= tgt_hw:
            tile_hw, n_hw, mask1 = HW, 1, False
        else:
            tile_hw = tgt_hw
            n_hw = -(-HW // tile_hw)
            mask1 = (n_hw * tile_hw != HW)

        tile3 = pl.BlockSpec((None, C, tile_hw), lambda n, i: (n, 0, i))
        cos_partials = pl.pallas_call(
            partial(_cos_partial_kernel, hw=HW, tile_hw=tile_hw,
                    need_mask=mask1),
            out_shape=jax.ShapeDtypeStruct((N, 1, tile_hw), jnp.float32),
            grid=(N, n_hw),
            in_specs=[tile3, tile3],
            out_specs=pl.BlockSpec((None, 1, tile_hw), lambda n, i: (n, 0, 0)),
            compiler_params=pltpu.CompilerParams(
                dimension_semantics=("parallel", "arbitrary"),
                vmem_limit_bytes=_VMEM_LIMIT),
        )(p3, t3)
        cosine_term = jnp.sum(cos_partials) / jnp.float32(N * HW)
        ct = jnp.reshape(cosine_term, (1, 1)).astype(jnp.float32)
    else:
        ct = jnp.zeros((1, 1), jnp.float32)   # statically unused in the kernel

    # ---------------- pass 2: elementwise clipped l1 / pseudo-huber --------
    lane, rows, pad = _dense_layout(total)
    p2d = _as_dense(pred, lane, pad)
    t2d = _as_dense(target, lane, pad)

    tgt_r = max(8, (_TARGET_BLOCK_ELEMS // lane) // 8 * 8)
    tile_r = rows if rows <= tgt_r else tgt_r
    n_blocks = -(-rows // tile_r)
    n_par = 2 if (n_blocks % 2 == 0 and n_blocks >= 2) else 1   # megacore split
    n_inner = n_blocks // n_par
    mask2 = (n_par * n_inner * tile_r * lane != total)

    data_spec = pl.BlockSpec((tile_r, lane),
                             lambda o, i: (o * n_inner + i, 0))
    loss_partials = pl.pallas_call(
        partial(_loss_partial_kernel, criterion=criterion,
                loss_lambda=loss_lambda, clip_min=float(clip_min),
                clip_max=float(clip_max), n_inner=n_inner, tile_r=tile_r,
                lane=lane, n_valid=total, need_mask=mask2),
        out_shape=jax.ShapeDtypeStruct((n_par, tile_r, lane), jnp.float32),
        grid=(n_par, n_inner),
        in_specs=[pl.BlockSpec((1, 1), lambda o, i: (0, 0),
                               memory_space=pltpu.SMEM),
                  data_spec, data_spec],
        out_specs=pl.BlockSpec((None, tile_r, lane), lambda o, i: (o, 0, 0)),
        compiler_params=pltpu.CompilerParams(
            dimension_semantics=("parallel", "arbitrary"),
            vmem_limit_bytes=_VMEM_LIMIT),
    )(ct, p2d, t2d)

    loss = jnp.sum(loss_partials) / jnp.float32(total)
    return jnp.float32(loss_weight) * loss


# --------------------------------------------------------------------------
# Pure-JAX reference (mirrors the torch module) for correctness checking
# --------------------------------------------------------------------------
def _chc_ref(pred, target, loss_weight, criterion, loss_lambda,
             clip_min, clip_max):
    p = pred.astype(jnp.float32)
    t = target.astype(jnp.float32)
    dot = jnp.sum(p * t, axis=1)
    denom = jnp.maximum(jnp.linalg.norm(p, axis=1) * jnp.linalg.norm(t, axis=1),
                        1e-20)
    cosine_term = jnp.mean(1.0 - dot / denom)
    d = p - t
    base = jnp.abs(d) if criterion == 'l1' else jnp.sqrt(d * d + _EPS_HUBER)
    return loss_weight * jnp.mean(
        jnp.clip(base + loss_lambda * cosine_term, clip_min, clip_max))


if __name__ == "__main__":
    key = jax.random.PRNGKey(0)
    k1, k2, k3, k4 = jax.random.split(key, 4)

    # main shapes (aligned path)
    N, C, H, W = 2, 4, 16, 16
    pred = jax.random.uniform(k1, (N, C, H, W), dtype=jnp.float32)
    target = jax.random.uniform(k2, (N, C, H, W), dtype=jnp.float32)

    configs = [
        dict(loss_weight=1.0, criterion='huber', loss_lambda=0.0),
        dict(loss_weight=1.0, criterion='huber', loss_lambda=0.25),
        dict(loss_weight=0.5, criterion='l1', loss_lambda=0.1),
    ]
    for cfg in configs:
        out = chc_loss(pred, target, clip_min=0.003921, clip_max=0.996078,
                       **cfg)
        out = jax.block_until_ready(out)
        ref = _chc_ref(pred, target, cfg['loss_weight'], cfg['criterion'],
                       cfg['loss_lambda'], 0.003921, 0.996078)
        assert jnp.allclose(out, ref, rtol=1e-5, atol=1e-6), (out, ref, cfg)

    # odd (non-128-aligned) shapes exercise the masked/padded tail path
    pred2 = jax.random.uniform(k3, (2, 4, 10, 10), dtype=jnp.float32)
    target2 = jax.random.uniform(k4, (2, 4, 10, 10), dtype=jnp.float32)
    out2 = chc_loss(pred2, target2, loss_weight=1.0, criterion='huber',
                    loss_lambda=0.25, clip_min=0.003921, clip_max=0.996078)
    out2 = jax.block_until_ready(out2)
    ref2 = _chc_ref(pred2, target2, 1.0, 'huber', 0.25, 0.003921, 0.996078)
    assert jnp.allclose(out2, ref2, rtol=1e-5, atol=1e-6), (out2, ref2)

    # bf16 inputs exercise the in-kernel cast path (f32 math inside)
    pred3 = pred.astype(jnp.bfloat16)
    target3 = target.astype(jnp.bfloat16)
    out3 = chc_loss(pred3, target3, loss_weight=1.0, criterion='huber',
                    loss_lambda=0.25, clip_min=0.003921, clip_max=0.996078)
    out3 = jax.block_until_ready(out3)
    ref3 = _chc_ref(pred3, target3, 1.0, 'huber', 0.25, 0.003921, 0.996078)
    assert jnp.allclose(out3, ref3, rtol=2e-3, atol=2e-3), (out3, ref3)

    print("KERNEL_OK")
</pallas_src>

<mosaic_0001>
module attributes {stable_mosaic.version = 11 : i64} {
  func.func @_loss_partial_kernel(%arg0: i32, %arg1: i32, %arg2: memref<1x1xf32, #tpu.memory_space<smem>>, %arg3: memref<1x2048xf32, #tpu.memory_space<vmem>>, %arg4: memref<1x2048xf32, #tpu.memory_space<vmem>>, %arg5: memref<1x1x2048xf32, #tpu.memory_space<vmem>>) attributes {dimension_semantics = [#tpu.dimension_semantics<parallel>, #tpu.dimension_semantics<arbitrary>], iteration_bounds = array<i64: 1, 1>, scalar_prefetch = 0 : i64, scratch_operands = 0 : i64, tpu.core_type = #tpu.core_type<tc>, window_params = [{transform_indices = @transform_0, window_bounds = array<i64: 1, 1>}, {transform_indices = @transform_1, window_bounds = array<i64: 1, 2048>}, {transform_indices = @transform_2, window_bounds = array<i64: 1, 2048>}, {transform_indices = @transform_3, window_bounds = array<i64: 1, 1, 2048>}]} {
    %c0_i32 = arith.constant 0 : i32
    %0 = arith.cmpi eq, %arg1, %c0_i32 : i32
    %1 = arith.extui %0 : i1 to i32
    %c0_i32_0 = arith.constant 0 : i32
    %2 = arith.cmpi ne, %1, %c0_i32_0 : i32
    scf.if %2 {
      %cst_12 = arith.constant 0.000000e+00 : f32
      %20 = vector.broadcast %cst_12 : f32 to vector<1x2048xf32>
      %c0_13 = arith.constant 0 : index
      %c0_14 = arith.constant 0 : index
      %c0_15 = arith.constant 0 : index
      %21 = vector.load %arg5[%c0_13, %c0_14, %c0_15] : memref<1x1x2048xf32, #tpu.memory_space<vmem>>, vector<1x1x2048xf32>
      %22 = vector.shape_cast %21 : vector<1x1x2048xf32> to vector<1x2048xf32>
      %23 = vector.shape_cast %20 : vector<1x2048xf32> to vector<1x1x2048xf32>
      tpu.vector_store %arg5[%c0_13, %c0_14, %c0_15], %23 {strides = array<i32>} : memref<1x1x2048xf32, #tpu.memory_space<vmem>>, vector<1x1x2048xf32>,
    } else {
    }
    %c0 = arith.constant 0 : index
    %c0_1 = arith.constant 0 : index
    %3 = vector.load %arg3[%c0, %c0_1] : memref<1x2048xf32, #tpu.memory_space<vmem>>, vector<1x2048xf32>
    %c0_2 = arith.constant 0 : index
    %c0_3 = arith.constant 0 : index
    %4 = vector.load %arg4[%c0_2, %c0_3] : memref<1x2048xf32, #tpu.memory_space<vmem>>, vector<1x2048xf32>
    %5 = arith.subf %3, %4 : vector<1x2048xf32>
    %6 = arith.mulf %5, %5 : vector<1x2048xf32>
    %cst = arith.constant 9.99999996E-13 : f32
    %7 = vector.broadcast %cst : f32 to vector<1x2048xf32>
    %8 = arith.addf %6, %7 : vector<1x2048xf32>
    %9 = math.sqrt %8 : vector<1x2048xf32>
    %cst_4 = arith.constant 3.921000e-03 : f32
    %cst_5 = arith.constant 9.960780e-01 : f32
    %10 = vector.broadcast %cst_4 : f32 to vector<1x2048xf32>
    %11 = arith.maximumf %10, %9 : vector<1x2048xf32>
    %12 = vector.broadcast %cst_5 : f32 to vector<1x2048xf32>
    %13 = arith.minimumf %12, %11 : vector<1x2048xf32>
    %c0_6 = arith.constant 0 : index
    %c0_7 = arith.constant 0 : index
    %c0_8 = arith.constant 0 : index
    %14 = vector.load %arg5[%c0_6, %c0_7, %c0_8] : memref<1x1x2048xf32, #tpu.memory_space<vmem>>, vector<1x1x2048xf32>
    %15 = vector.shape_cast %14 : vector<1x1x2048xf32> to vector<1x2048xf32>
    %16 = arith.addf %15, %13 : vector<1x2048xf32>
    %c0_9 = arith.constant 0 : index
    %c0_10 = arith.constant 0 : index
    %c0_11 = arith.constant 0 : index
    %17 = vector.load %arg5[%c0_9, %c0_10, %c0_11] : memref<1x1x2048xf32, #tpu.memory_space<vmem>>, vector<1x1x2048xf32>
    %18 = vector.shape_cast %17 : vector<1x1x2048xf32> to vector<1x2048xf32>
    %19 = vector.shape_cast %16 : vector<1x2048xf32> to vector<1x1x2048xf32>
    tpu.vector_store %arg5[%c0_9, %c0_10, %c0_11], %19 {strides = array<i32>} : memref<1x1x2048xf32, #tpu.memory_space<vmem>>, vector<1x1x2048xf32>,
    return
  }
  func.func @transform_0(%arg0: i32, %arg1: i32) -> (i32, i32) {
    %c0_i32 = arith.constant 0 : i32
    %c0_i32_0 = arith.constant 0 : i32
    %c0_i32_1 = arith.constant 0 : i32
    return %c0_i32, %c0_i32_0 : i32, i32
  }
  func.func @transform_1(%arg0: i32, %arg1: i32) -> (i32, i32) {
    %c1_i32 = arith.constant 1 : i32
    %0 = arith.muli %arg0, %c1_i32 : i32
    %1 = arith.addi %0, %arg1 : i32
    %c0_i32 = arith.constant 0 : i32
    %c0_i32_0 = arith.constant 0 : i32
    return %1, %c0_i32 : i32, i32
  }
  func.func @transform_2(%arg0: i32, %arg1: i32) -> (i32, i32) {
    %c1_i32 = arith.constant 1 : i32
    %0 = arith.muli %arg0, %c1_i32 : i32
    %1 = arith.addi %0, %arg1 : i32
    %c0_i32 = arith.constant 0 : i32
    %c0_i32_0 = arith.constant 0 : i32
    return %1, %c0_i32 : i32, i32
  }
  func.func @transform_3(%arg0: i32, %arg1: i32) -> (i32, i32, i32) {
    %c0_i32 = arith.constant 0 : i32
    %c0_i32_0 = arith.constant 0 : i32
    %c0_i32_1 = arith.constant 0 : i32
    return %arg0, %c0_i32, %c0_i32_0 : i32, i32, i32
  }
}

</mosaic_0001>

<bundles_post_ra>
// kernel: tpu_custom_call.1
= control target key start
LH: loop header
LB: loop body
LE: loop exit
PB: predicated region body
PF: predicated region fallthrough
CT: control target
= control target key end

     0   :  { %9 = vsyncpa [#allocation4], 0  ;;  %s245_s0 = inlined_call_operand.<no memory space> [shape: f32[1,1], index: 0, kind: input, shape index: {}]   ;;  %s246_s1 = inlined_call_operand.hbm [shape: f32[1,2048], index: 1, kind: input, shape index: {}]   ;;  %s247_s2 = inlined_call_operand.hbm [shape: f32[1,2048], index: 2, kind: input, shape index: {}]   ;;  %s248_s3 = inlined_call_operand.hbm [shape: f32[1,1,2048], index: 3, kind: output, shape index: {}]  }
   0x1   :  { %10 = vsyncpa [#allocation7], 0 }
   0x2   :  { %11 = vsyncpa [#allocation5], 0  ;;  %s186_s12 = smov [#allocation3]   ;;  %s187_s14 = smov [#allocation6]  }
   0x3   :  { %s24_s13 = sshll.u32 %s186_s12, 4  ;;  %s38_s15 = sshll.u32 %s187_s14, 4  ;;  %s25_s13 = int_to_ptr.vmem [resolvable:$true] %s24_s13  ;;  %s39_s15 = int_to_ptr.vmem [resolvable:$true] %s38_s15 }
   0x4   :  { %s114_s17 = scalar_lea.hbm %s246_s1, 256 }
   0x5   :  { %p115_p0 = scmp.ne.s32.totalorder %s246_s1, %s114_s17  ;;  %p118_p1 = scmp.lt.u32.totalorder %s114_s17, %s246_s1 }
   0x7   :  { %p120_p2 = pnand %p118_p1, %p115_p0 }
   0x9   :  { %123 = shalt.err (!%p120_p2)
}
   0xa   :  { %s124_s22 = scalar_lea.vmem %s25_s13, 256  ;;  %p129_p4 = scmp.lt.s32.totalorder %s25_s13, %s25_s13 }
   0xb   :  { %p125_p3 = scmp.ne.s32.totalorder %s25_s13, %s124_s22  ;;  %p130_p5 = scmp.lt.s32.totalorder %s124_s22, %s124_s22 }
   0xd   :  { %p131_p6 = por %p130_p5, %p129_p4 }
   0xf   :  { %p132_p7 = pnand %p131_p6, %p125_p3 }
  0x11   :  { %135 = shalt.err (!%p132_p7)
}
  0x12   :  { %27 = dma.hbm_to_vmem [thread:$0]  %s246_s1, 256, %s25_s13, [#allocation4]  }
  0x13   :  { %s136_s27 = scalar_lea.hbm %s247_s2, 256 }
  0x14   :  { %p137_p8 = scmp.ne.s32.totalorder %s247_s2, %s136_s27  ;;  %p140_p9 = scmp.lt.u32.totalorder %s136_s27, %s247_s2 }
  0x16   :  { %p142_p10 = pnand %p140_p9, %p137_p8 }
  0x18   :  { %145 = shalt.err (!%p142_p10)
}
  0x19   :  { %s146_s5 = scalar_lea.vmem %s39_s15, 256  ;;  %p151_p12 = scmp.lt.s32.totalorder %s39_s15, %s39_s15 }
  0x1a   :  { %p147_p11 = scmp.ne.s32.totalorder %s39_s15, %s146_s5  ;;  %p152_p13 = scmp.lt.s32.totalorder %s146_s5, %s146_s5 }
  0x1c   :  { %p153_p0 = por %p152_p13, %p151_p12 }
  0x1e   :  { %p154_p1 = pnand %p153_p0, %p147_p11 }
  0x20   :  { %157 = shalt.err (!%p154_p1)
}
  0x21   :  { %41 = dma.hbm_to_vmem [thread:$0]  %s247_s2, 256, %s39_s15, [#allocation7]  }
  0x22   :  { %180 = dma.done.wait [#allocation4], 256  }
  0x23   :  { %181 = vsyncadd [#allocation4], 4294967040 }
  0x24   :  { %182 = dma.done.wait [#allocation7], 256  }
  0x25   :  { %183 = vsyncadd [#allocation7], 4294967040  ;;  %v56_v0 = vld [vmem:[#allocation3] sm:$0xff]  ;;  %v58_v1 = vld [vmem:[#allocation6] sm:$0xff]  ;;  %s188_s2 = smov [#allocation8]  }
  0x26   :  { %v57_v2 = vld [vmem:[#allocation3 + $0x8] sm:$0xff]  ;;  %v60_v3 = vsub.f32 %v56_v0, %v58_v1  ;;  %v59_v4 = vld [vmem:[#allocation6 + $0x8] sm:$0xff]  ;;  %s96_s7 = sshll.u32 %s188_s2, 4  ;;  %s97_s7 = int_to_ptr.vmem [resolvable:$true] %s96_s7 }
  0x27   :  { %v61_v5 = vsub.f32 %v57_v2, %v59_v4  ;;  %s158_s8 = scalar_lea.vmem %s97_s7, 256  ;;  %p163_p3 = scmp.lt.s32.totalorder %s97_s7, %s97_s7 }
  0x28   :  { %v62_v6 = vmul.f32 %v60_v3, %v60_v3  ;;  %p159_p2 = scmp.ne.s32.totalorder %s97_s7, %s158_s8  ;;  %p164_p4 = scmp.lt.s32.totalorder %s158_s8, %s158_s8 }
  0x29   :  { %v63_v7 = vmul.f32 %v61_v5, %v61_v5 }
  0x2a   :  { %v64_v8 = vadd.f32 1e-12, %v62_v6  ;;  %p165_p5 = por %p164_p4, %p163_p3 }
  0x2b   :  { %v65_v9 = vadd.f32 1e-12, %v63_v7 }
  0x2c   :  { %110 = vrsqrt.f32 %v64_v8  ;;  %vm68_vm0 = vcmp.eq.f32.partialorder %v64_v8, inf  ;;  %v71_v11 = vand.u32 2147483648, %v64_v8  ;;  %vm70_vm1 = vcmp.eq.f32.partialorder %v64_v8, 0.0  ;;  %p166_p6 = pnand %p165_p5, %p159_p2 }
  0x2d   :  { %112 = vrsqrt.f32 %v65_v9  ;;  %vm75_vm2 = vcmp.eq.f32.partialorder %v65_v9, inf  ;;  %v78_v14 = vand.u32 2147483648, %v65_v9  ;;  %vm77_vm3 = vcmp.eq.f32.partialorder %v65_v9, 0.0 }
  0x36   :  { %v111_v10 = vpop.eup %110 }
  0x37   :  { %v113_v12 = vpop.eup %112  ;;  %v67_v13 = vmul.f32 %v111_v10, %v64_v8 }
  0x38   :  { %v74_v15 = vmul.f32 %v113_v12, %v65_v9 }
  0x39   :  { %v69_v16 = vsel %vm68_vm0, %v64_v8, %v67_v13 }
  0x3a   :  { %v72_v17 = vsel %vm70_vm1, %v71_v11, %v69_v16  ;;  %v76_v18 = vsel %vm75_vm2, %v65_v9, %v74_v15 }
  0x3b   :  { %v80_v19 = vmax.f32 %v72_v17, 0.003921  ;;  %v79_v20 = vsel %vm77_vm3, %v78_v14, %v76_v18 }
  0x3c   :  { %v81_v21 = vmax.f32 %v79_v20, 0.003921 }
  0x3d   :  { %v82_v22 = vmin.f32 %v80_v19, 0.996078 }
  0x3e   :  { %v83_v23 = vmin.f32 %v81_v21, 0.996078 }
  0x3f   :  { %88 = vst [vmem:[#allocation8] sm:$0xff] %v82_v22 }
  0x40   :  { %89 = vst [vmem:[#allocation8 + $0x8] sm:$0xff] %v83_v23 }
  0x41   :  { %169 = shalt.err (!%p166_p6)
}
  0x42   :  { %s170_s11 = scalar_lea.hbm %s248_s3, 256 }
  0x43   :  { %p171_p7 = scmp.ne.s32.totalorder %s248_s3, %s170_s11  ;;  %p174_p8 = scmp.lt.u32.totalorder %s170_s11, %s248_s3 }
  0x45   :  { %p176_p9 = pnand %p174_p8, %p171_p7 }
  0x47   :  { %179 = shalt.err (!%p176_p9)
}
  0x48   :  { %99 = dma.vmem_to_hbm [thread:$0]  %s97_s7, 256, %s248_s3, [#allocation5]  }
  0x49   :  { %184 = dma.done.wait [#allocation5], 256  }
  0x4a   :  { %185 = vsyncadd [#allocation5], 4294967040 }
  0x4b   :  { %103 = vsyncpa [#allocation4], 1 }
  0x4c   :  { %104 = vsyncpa [#allocation7], 1 }
  0x4d   :  { %105 = vsyncpa [#allocation5], 1 }

</bundles_post_ra>
